<compile_context>
chip_gen: v5e
topology: v5e:2x2
jax: 0.10.0
libtpu: 0.0.40
codegen_flags: <defaults>
</compile_context>

<pallas_src>
import jax
import jax.numpy as jnp
from jax.experimental import pallas as pl
from jax.experimental.pallas import tpu as pltpu


# ----------------------------------------------------------------- fused path

def _se_fused_kernel(x_ref, wd_ref, bd_ref, wu_ref, bu_ref, o_ref):
    # x_ref/o_ref: (Nb, C, HW) native dtype (NCHW flattened, HW on lanes)
    # wd: (C, I); bd: (1, I) f32; wu: (I, C); bu: (1, C) f32
    x = x_ref[...]                                   # keep native dtype
    inv_hw = 1.0 / x.shape[2]
    # global average pool over the spatial (lane) axis, f32 accumulation
    pooled = jnp.sum(x, axis=2, dtype=jnp.float32) * inv_hw            # (Nb, C)
    mlp_dt = wd_ref.dtype
    # down 1x1 conv + ReLU (MXU, f32 accumulate)
    h = jnp.dot(pooled.astype(mlp_dt), wd_ref[...],
                preferred_element_type=jnp.float32) + bd_ref[...]
    h = jnp.maximum(h, 0.0)                                            # (Nb, I)
    # up 1x1 conv + sigmoid
    s = jnp.dot(h.astype(mlp_dt), wu_ref[...],
                preferred_element_type=jnp.float32) + bu_ref[...]
    s = jax.nn.sigmoid(s).astype(x.dtype)                              # (Nb, C)
    # scale: s broadcasts over the lane (HW) axis
    o_ref[...] = x * s[:, :, None]


# ----------------------------------------------------------------- tiled path

def _pool_sum_kernel(x_ref, sum_ref):
    # x_ref: (1, Ct, HW); sum_ref: (1, Ct, 1) f32.  Independent per C-tile, so
    # no accumulator / pl.when is needed and the grid is fully parallel.
    sum_ref[...] = jnp.sum(x_ref[...], axis=2, keepdims=True, dtype=jnp.float32)


def _scale_kernel(s_ref, x_ref, o_ref):
    # s_ref: (1, Ct, 1) in x dtype; x_ref/o_ref: (1, Ct, HW)
    o_ref[...] = x_ref[...] * s_ref[...]


# ------------------------------------------------------------------- helpers

def _vmem_capacity_bytes():
    try:
        return int(pltpu.get_tpu_info().vmem_capacity_bytes)
    except Exception:
        return 64 * 1024 * 1024   # conservative: v7x has the smallest VMEM (64 MiB)


def _num_tensorcores():
    # Best-effort TensorCore count (v7x has 2 per chip).  Heuristic only.
    try:
        info = pltpu.get_tpu_info()
        for attr in ("num_cores", "core_count", "num_tensorcores", "tensorcore_count"):
            v = getattr(info, attr, None)
            if v:
                return max(1, int(v))
    except Exception:
        pass
    return 1


def _sublane_tile(dsize):
    # 8 rows for f32, 16 for bf16, 32 for int8/fp8 (packed sublane tiling).
    return 8 * max(1, 4 // dsize)


def _pick_c_tile(c, hw, dsize, budget_bytes):
    """Largest sublane-aligned divisor of C whose double-buffered in+out blocks
    (~4 * Ct * HW * dsize bytes) fit the budget."""
    sub = _sublane_tile(dsize)
    max_rows = budget_bytes // max(1, 4 * hw * dsize)
    if max_rows >= c or c <= sub or c % sub != 0:
        # TODO(synk): ragged C (not a multiple of the sublane tile) with a huge
        # feature map falls back to full-C blocks; masked ragged tiles would be
        # needed to bound VMEM in that (unrealistic for convnets) case.
        return c
    t = max(sub, min(c - sub, (max_rows // sub) * sub))
    while t >= sub:
        if c % t == 0:
            return t
        t -= sub
    return c


# ------------------------------------------------------------------- wrapper

def se_block(x_nchw, w_down, b_down, w_up, b_up, *,
             donate_input=False, force_tiled=False, c_tile=None):
    """x_nchw: (N, C, H, W); w_down: (I, C, 1, 1); w_up: (C, I, 1, 1)."""
    N, C, H, W = x_nchw.shape
    I = w_down.shape[0]
    assert H == W, "SEBlock uses avg_pool2d(kernel_size=W); assumes square input"
    HW = H * W
    dsize = jnp.dtype(x_nchw.dtype).itemsize

    # Free reshape: keep NCHW memory layout, HW flattened onto the lane axis.
    x = x_nchw.reshape(N, C, HW)

    # MLP operand dtype: bf16 MXU inputs for sub-f32 activations (v5e MXU is
    # bf16-native; f32 x f32 lowers to multi-pass emulation), f32 otherwise so
    # the f32 path stays bit-accurate vs. the reference.
    mlp_dt = jnp.float32 if dsize >= 4 else jnp.bfloat16
    wd = w_down.reshape(I, C).T.astype(mlp_dt)      # (C, I)
    wu = w_up.reshape(C, I).T.astype(mlp_dt)        # (I, C)
    bd = b_down.reshape(1, I).astype(jnp.float32)
    bu = b_up.reshape(1, C).astype(jnp.float32)

    vmem_cap = _vmem_capacity_bytes()
    usable = vmem_cap - (8 << 20)                   # leave compiler headroom
    wbytes = (2 * (wd.size + wu.size) * jnp.dtype(mlp_dt).itemsize
              + 2 * (bd.size + bu.size) * 4)
    per_img = C * HW * dsize

    def fused_need(nb):
        # double-buffered in + out blocks, weights, plus the f32 pooled-reduce
        # temporary when the activations are sub-f32.
        extra = nb * C * HW * 4 if dsize < 4 else 0
        return 4 * nb * per_img + extra + wbytes

    sub = _sublane_tile(dsize)
    # For a single image on a multi-TC chip, prefer the tiled path: its fully
    # parallel (N, C-tiles) grids shard the memory-bound scale pass across TCs.
    split_single = (not force_tiled and N == 1 and _num_tensorcores() >= 2
                    and per_img >= (2 << 20) and C % (2 * sub) == 0)

    use_fused = (not force_tiled) and (not split_single) and fused_need(1) <= usable

    if use_fused:
        # Batch Nb images per grid step (amortizes ~0.35us/step overhead) while
        # keeping >= 2 grid steps when N >= 2 so both v7x TCs stay fed.
        nb = 1
        for cand in range(1, N + 1):
            if N % cand or fused_need(cand) > usable:
                continue
            if N >= 2 and N // cand < 2:
                continue
            nb = cand
        steps = N // nb
        vmem_limit = int(min(max(fused_need(nb) + (4 << 20), 32 << 20),
                             vmem_cap - (4 << 20)))

        out = pl.pallas_call(
            _se_fused_kernel,
            out_shape=jax.ShapeDtypeStruct((N, C, HW), x.dtype),
            grid_spec=pltpu.PrefetchScalarGridSpec(
                num_scalar_prefetch=0,
                grid=(steps,),
                in_specs=[
                    pl.BlockSpec((nb, C, HW), lambda n: (n, 0, 0)),
                    pl.BlockSpec((C, I), lambda n: (0, 0)),
                    pl.BlockSpec((1, I), lambda n: (0, 0)),
                    pl.BlockSpec((I, C), lambda n: (0, 0)),
                    pl.BlockSpec((1, C), lambda n: (0, 0)),
                ],
                out_specs=pl.BlockSpec((nb, C, HW), lambda n: (n, 0, 0)),
            ),
            compiler_params=pltpu.CompilerParams(
                dimension_semantics=("parallel",),
                vmem_limit_bytes=vmem_limit),
            cost_estimate=pl.CostEstimate(
                flops=int(2 * N * C * HW + 4 * N * C * I),
                transcendentals=int(N * C),
                bytes_accessed=int(2 * N * per_img + wbytes)),
            input_output_aliases={0: 0} if donate_input else {},
        )(x, wd, bd, wu, bu)
    else:
        # ----- tiled 2-pass path: tile the channel (sublane) axis -----
        tile_budget = usable
        if split_single:
            tile_budget = min(tile_budget, 2 * per_img)   # force >= 2 C-tiles
        ct = c_tile if c_tile is not None else _pick_c_tile(C, HW, dsize, tile_budget)
        assert C % ct == 0, "c_tile must divide C"
        n_ct = C // ct
        pass_vmem = int(min(max(4 * ct * HW * dsize + (4 << 20), 32 << 20),
                            vmem_cap - (4 << 20)))

        # pass 1: per-(image, C-tile) pooled sums; fully parallel grid.
        sums = pl.pallas_call(
            _pool_sum_kernel,
            out_shape=jax.ShapeDtypeStruct((N, C, 1), jnp.float32),
            grid_spec=pltpu.PrefetchScalarGridSpec(
                num_scalar_prefetch=0,
                grid=(N, n_ct),
                in_specs=[pl.BlockSpec((1, ct, HW), lambda n, c: (n, c, 0))],
                out_specs=pl.BlockSpec((1, ct, 1), lambda n, c: (n, c, 0)),
            ),
            compiler_params=pltpu.CompilerParams(
                dimension_semantics=("parallel", "parallel"),
                vmem_limit_bytes=pass_vmem),
            cost_estimate=pl.CostEstimate(
                flops=int(N * C * HW), transcendentals=0,
                bytes_accessed=int(N * per_img + N * C * 4)),
        )(x)

        # tiny batched SE MLP (N x C) once, in plain JAX (off the grid's
        # critical path; its cost is negligible vs. the HBM traffic of x).
        pooled = sums[:, :, 0] * (1.0 / HW)                            # (N, C) f32
        h = jnp.maximum(pooled @ wd.astype(jnp.float32) + bd, 0.0)     # (N, I)
        s = jax.nn.sigmoid(h @ wu.astype(jnp.float32) + bu)            # (N, C)
        s3 = s.astype(x.dtype)[:, :, None]                             # (N, C, 1)

        # pass 2: rescale; fully parallel (N, C-tiles) grid (feeds both v7x TCs).
        # NOTE(v6e): pipeline_mode=pl.Buffered(3) on the x spec is a further
        # option when blocks are large and the grid is short.
        out = pl.pallas_call(
            _scale_kernel,
            out_shape=jax.ShapeDtypeStruct((N, C, HW), x.dtype),
            grid_spec=pltpu.PrefetchScalarGridSpec(
                num_scalar_prefetch=0,
                grid=(N, n_ct),
                in_specs=[
                    pl.BlockSpec((1, ct, 1), lambda n, c: (n, c, 0)),
                    pl.BlockSpec((1, ct, HW), lambda n, c: (n, c, 0)),
                ],
                out_specs=pl.BlockSpec((1, ct, HW), lambda n, c: (n, c, 0)),
            ),
            compiler_params=pltpu.CompilerParams(
                dimension_semantics=("parallel", "parallel"),
                vmem_limit_bytes=pass_vmem),
            cost_estimate=pl.CostEstimate(
                flops=int(N * C * HW), transcendentals=0,
                bytes_accessed=int(2 * N * per_img + N * C * dsize)),
            input_output_aliases={1: 0} if donate_input else {},
        )(s3, x)

    return out.reshape(N, C, H, W)


def se_block_ref(x, w_down, b_down, w_up, b_up):
    """Pure-JAX reference for correctness checking."""
    N, C, H, W = x.shape
    I = w_down.shape[0]
    pooled = jnp.mean(x, axis=(2, 3))                       # (N, C)
    h = jnp.maximum(pooled @ w_down.reshape(I, C).T + b_down, 0.0)
    s = jax.nn.sigmoid(h @ w_up.reshape(C, I).T + b_up)     # (N, C)
    return x * s[:, :, None, None]


if __name__ == "__main__":
    key = jax.random.PRNGKey(0)
    N, C, H, W = 2, 16, 16, 16
    INTERNAL = 8

    k1, k2, k3, k4, k5 = jax.random.split(key, 5)
    x = jax.random.normal(k1, (N, C, H, W), dtype=jnp.float32)
    # Conv2d(C -> INTERNAL, 1x1) and Conv2d(INTERNAL -> C, 1x1) params
    w_down = jax.random.normal(k2, (INTERNAL, C, 1, 1), dtype=jnp.float32) * 0.1
    b_down = jax.random.normal(k3, (INTERNAL,), dtype=jnp.float32) * 0.1
    w_up = jax.random.normal(k4, (C, INTERNAL, 1, 1), dtype=jnp.float32) * 0.1
    b_up = jax.random.normal(k5, (C,), dtype=jnp.float32) * 0.1

    ref = se_block_ref(x, w_down, b_down, w_up, b_up)

    # fused single-pass path (default)
    out_fused = jax.block_until_ready(se_block(x, w_down, b_down, w_up, b_up))
    assert out_fused.shape == (N, C, H, W)
    assert jnp.allclose(out_fused, ref, atol=1e-5, rtol=1e-5), "fused path mismatch"

    # tiled (pool + scale) VMEM-fallback path, exercised with a 2-way C tiling
    out_tiled = jax.block_until_ready(
        se_block(x, w_down, b_down, w_up, b_up, force_tiled=True, c_tile=8))
    assert jnp.allclose(out_tiled, ref, atol=1e-5, rtol=1e-5), "tiled path mismatch"

    # bf16 activations (exercises the bf16 MXU MLP path; looser tolerance)
    xb = x.astype(jnp.bfloat16)
    ref_b = se_block_ref(xb.astype(jnp.float32), w_down, b_down, w_up, b_up)
    out_b = jax.block_until_ready(se_block(xb, w_down, b_down, w_up, b_up))
    assert out_b.dtype == jnp.bfloat16
    assert jnp.allclose(out_b.astype(jnp.float32), ref_b, atol=5e-2, rtol=5e-2), \
        "bf16 fused path mismatch"

    print("KERNEL_OK")
</pallas_src>

<mosaic_0001>
module attributes {stable_mosaic.version = 11 : i64} {
  func.func @_se_fused_kernel(%arg0: i32, %arg1: memref<1x16x256xf32, #tpu.memory_space<vmem>>, %arg2: memref<16x8xf32, #tpu.memory_space<vmem>>, %arg3: memref<1x8xf32, #tpu.memory_space<vmem>>, %arg4: memref<8x16xf32, #tpu.memory_space<vmem>>, %arg5: memref<1x16xf32, #tpu.memory_space<vmem>>, %arg6: memref<1x16x256xf32, #tpu.memory_space<vmem>>) attributes {dimension_semantics = [#tpu.dimension_semantics<parallel>], iteration_bounds = array<i64: 2>, scalar_prefetch = 0 : i64, scratch_operands = 0 : i64, tpu.core_type = #tpu.core_type<tc>, window_params = [{transform_indices = @transform_0, window_bounds = array<i64: 1, 16, 256>}, {pipeline_mode = #tpu.pipeline_mode<synchronous>, transform_indices = @transform_1, window_bounds = array<i64: 16, 8>}, {pipeline_mode = #tpu.pipeline_mode<synchronous>, transform_indices = @transform_2, window_bounds = array<i64: 1, 8>}, {pipeline_mode = #tpu.pipeline_mode<synchronous>, transform_indices = @transform_3, window_bounds = array<i64: 8, 16>}, {pipeline_mode = #tpu.pipeline_mode<synchronous>, transform_indices = @transform_4, window_bounds = array<i64: 1, 16>}, {transform_indices = @transform_5, window_bounds = array<i64: 1, 16, 256>}]} {
    %c0 = arith.constant 0 : index
    %c0_0 = arith.constant 0 : index
    %c0_1 = arith.constant 0 : index
    %0 = vector.load %arg1[%c0, %c0_0, %c0_1] : memref<1x16x256xf32, #tpu.memory_space<vmem>>, vector<1x16x256xf32>
    %cst = arith.constant dense<0.000000e+00> : vector<1x16xf32>
    %1 = vector.multi_reduction <add>, %0, %cst [2] : vector<1x16x256xf32> to vector<1x16xf32>
    %cst_2 = arith.constant 3.906250e-03 : f32
    %2 = vector.broadcast %cst_2 : f32 to vector<1x16xf32>
    %3 = arith.mulf %1, %2 : vector<1x16xf32>
    %c0_3 = arith.constant 0 : index
    %c0_4 = arith.constant 0 : index
    %4 = vector.load %arg2[%c0_3, %c0_4] : memref<16x8xf32, #tpu.memory_space<vmem>>, vector<16x8xf32>
    %cst_5 = arith.constant dense<0.000000e+00> : vector<1x8xf32>
    %5 = tpu.matmul %3, %4, %cst_5 {dimension_numbers = #tpu.dot_dimension_numbers<[1], [0], [0], [1], [0, 0, 1, 1], [], []>} : vector<1x16xf32>, vector<16x8xf32>, vector<1x8xf32> -> vector<1x8xf32>
    %c0_6 = arith.constant 0 : index
    %c0_7 = arith.constant 0 : index
    %6 = vector.load %arg3[%c0_6, %c0_7] : memref<1x8xf32, #tpu.memory_space<vmem>>, vector<1x8xf32>
    %7 = arith.addf %5, %6 : vector<1x8xf32>
    %cst_8 = arith.constant 0.000000e+00 : f32
    %8 = vector.broadcast %cst_8 : f32 to vector<1x8xf32>
    %9 = arith.maximumf %7, %8 : vector<1x8xf32>
    %c0_9 = arith.constant 0 : index
    %c0_10 = arith.constant 0 : index
    %10 = vector.load %arg4[%c0_9, %c0_10] : memref<8x16xf32, #tpu.memory_space<vmem>>, vector<8x16xf32>
    %cst_11 = arith.constant dense<0.000000e+00> : vector<1x16xf32>
    %11 = tpu.matmul %9, %10, %cst_11 {dimension_numbers = #tpu.dot_dimension_numbers<[1], [0], [0], [1], [0, 0, 1, 1], [], []>} : vector<1x8xf32>, vector<8x16xf32>, vector<1x16xf32> -> vector<1x16xf32>
    %c0_12 = arith.constant 0 : index
    %c0_13 = arith.constant 0 : index
    %12 = vector.load %arg5[%c0_12, %c0_13] : memref<1x16xf32, #tpu.memory_space<vmem>>, vector<1x16xf32>
    %13 = arith.addf %11, %12 : vector<1x16xf32>
    %14 = arith.negf %13 : vector<1x16xf32>
    %15 = math.exp %14 : vector<1x16xf32>
    %cst_14 = arith.constant 1.000000e+00 : f32
    %16 = vector.broadcast %cst_14 : f32 to vector<1x16xf32>
    %17 = arith.addf %16, %15 : vector<1x16xf32>
    %18 = arith.divf %16, %17 : vector<1x16xf32>
    %19 = vector.shape_cast %18 : vector<1x16xf32> to vector<1x16x1xf32>
    %20 = vector.broadcast %19 : vector<1x16x1xf32> to vector<1x16x256xf32>
    %21 = arith.mulf %0, %20 : vector<1x16x256xf32>
    %c0_15 = arith.constant 0 : index
    %c0_16 = arith.constant 0 : index
    %c0_17 = arith.constant 0 : index
    %22 = vector.load %arg6[%c0_15, %c0_16, %c0_17] : memref<1x16x256xf32, #tpu.memory_space<vmem>>, vector<1x16x256xf32>
    tpu.vector_store %arg6[%c0_15, %c0_16, %c0_17], %21 {strides = array<i32>} : memref<1x16x256xf32, #tpu.memory_space<vmem>>, vector<1x16x256xf32>,
    return
  }
  func.func @transform_0(%arg0: i32) -> (i32, i32, i32) {
    %c0_i32 = arith.constant 0 : i32
    %c0_i32_0 = arith.constant 0 : i32
    %c0_i32_1 = arith.constant 0 : i32
    return %arg0, %c0_i32, %c0_i32_0 : i32, i32, i32
  }
  func.func @transform_1(%arg0: i32) -> (i32, i32) {
    %c0_i32 = arith.constant 0 : i32
    %c0_i32_0 = arith.constant 0 : i32
    %c0_i32_1 = arith.constant 0 : i32
    return %c0_i32, %c0_i32_0 : i32, i32
  }
  func.func @transform_2(%arg0: i32) -> (i32, i32) {
    %c0_i32 = arith.constant 0 : i32
    %c0_i32_0 = arith.constant 0 : i32
    %c0_i32_1 = arith.constant 0 : i32
    return %c0_i32, %c0_i32_0 : i32, i32
  }
  func.func @transform_3(%arg0: i32) -> (i32, i32) {
    %c0_i32 = arith.constant 0 : i32
    %c0_i32_0 = arith.constant 0 : i32
    %c0_i32_1 = arith.constant 0 : i32
    return %c0_i32, %c0_i32_0 : i32, i32
  }
  func.func @transform_4(%arg0: i32) -> (i32, i32) {
    %c0_i32 = arith.constant 0 : i32
    %c0_i32_0 = arith.constant 0 : i32
    %c0_i32_1 = arith.constant 0 : i32
    return %c0_i32, %c0_i32_0 : i32, i32
  }
  func.func @transform_5(%arg0: i32) -> (i32, i32, i32) {
    %c0_i32 = arith.constant 0 : i32
    %c0_i32_0 = arith.constant 0 : i32
    %c0_i32_1 = arith.constant 0 : i32
    return %arg0, %c0_i32, %c0_i32_0 : i32, i32, i32
  }
}

</mosaic_0001>

<bundles_post_ra>
// kernel: tpu_custom_call.1
= control target key start
LH: loop header
LB: loop body
LE: loop exit
PB: predicated region body
PF: predicated region fallthrough
CT: control target
= control target key end

     0   :  { %10 = vsyncpa [#allocation3], 0  ;;  %s818_s0 = inlined_call_operand.hbm [shape: f32[2,16,256], index: 0, kind: input, shape index: {}]   ;;  %s819_s1 = inlined_call_operand.vmem [shape: f32[16,8], index: 1, kind: input, shape index: {}]   ;;  %s820_s2 = inlined_call_operand.vmem [shape: f32[1,8], index: 2, kind: input, shape index: {}]   ;;  %s821_s3 = inlined_call_operand.vmem [shape: f32[8,16], index: 3, kind: input, shape index: {}]   ;;  %s822_s4 = inlined_call_operand.vmem [shape: f32[1,16], index: 4, kind: input, shape index: {}]   ;;  %s823_s5 = inlined_call_operand.hbm [shape: f32[2,16,256], index: 5, kind: output, shape index: {}]  }
   0x1   :  { %12 = vsyncpa [#allocation3 + $0x1], 0 }
   0x2   :  { %13 = vsyncpa [#allocation4], 0 }
   0x3   :  { %15 = vsyncpa [#allocation4 + $0x1], 0  ;;  %s656_s18 = smov 0   ;;  %s658_s19 = smov 0  }
   0x4   :  { %s660_s20 = smov 0   ;;  %s662_s21 = smov 0  }
   0x5 LB: > { %s677_s22 = sadd.s32 4294967295, %s620_s21   ;;  %s448_s23 = sadd.s32 4294967294, %s620_s21   ;;  %s620_s21 = sphi %s662_s21, %s833_s21   ;;  %s616_s20 = sphi %s660_s20, %s832_s20   ;;  %s612_s19 = sphi %s658_s19, %s831_s19   ;;  %s608_s18 = sphi %s656_s18, %s830_s18  }
   0x6   : > { %s681_s24 = sadd.s32 1, %s620_s21   ;;  %s28_s25 = sadd.s32 1, %s616_s20 }
   0x7   : > { %s25_s26 = ssub.s32 %s620_s21, %s681_s24  ;;  %p35_p0 = scmp.ne.s32.totalorder %s616_s20, %s612_s19 }
   0x8   : > { %p26_p1 = scmp.eq.s32.totalorder %s25_s26, 0  ;;  %p36_p2 = scmp.eq.s32.totalorder %s620_s21, 0 }
   0x9   : > { %p41_p3 = scmp.ne.s32.totalorder %s612_s19, %s608_s18  ;;  %p42_p4 = scmp.eq.s32.totalorder %s677_s22, 0 }
   0xa   : > { %s693_s27 = scalar_select %p26_p1, %s616_s20, %s28_s25  }
   0xb   : > { %p695_p5 = por %p36_p2, %p35_p0  ;;  %p699_p6 = por %p42_p4, %p41_p3 }
   0xc   : > { %p149_p7 = scmp.eq.s32.totalorder %s677_s22, 1  ;;  %p155_p8 = scmp.eq.s32.totalorder %s448_s23, 1 }
   0xd   : > { %p479_p10 = scmp.lt.s32.totalorder %s620_s21, 2  ;;  %s187_s7 = sand.u32 1, %s616_s20  }
   0xe   : > { %p706_p11 = por %p149_p7, %p35_p0  ;;  %p710_p12 = por %p155_p8, %p41_p3 }
   0xf   : > { %s465_s8 = sshll.u32 %s620_s21, 5  ;;  %s451_s9 = sshll.u32 %s187_s7, 5 }
  0x10   : > { %s196_s12 = scalar_lea.hbm %s818_s0, %s465_s8  ;;  %s191_s14 = scalar_lea.vmem [#allocation2], %s451_s9 }
  0x11   : > { %s197_s13 = sshll.u32 %s196_s12, 4  ;;  %s199_s15 = sshll.u32 %s191_s14, 4  ;;  %s198_s13 = int_to_ptr.hbm [resolvable:$true] %s197_s13  ;;  %s200_s15 = int_to_ptr.vmem [resolvable:$true] %s199_s15 }
  0x12   : > { %p721_p13 = pnand %p479_p10, %p695_p5  ;;  %p454_p0 = scmp.ge.s32.totalorder %s620_s21, 1 }
  0x13   : > { %p207_p1 = scmp.lt.s32.totalorder %s620_s21, 3  ;;  %s188_s17 = scalar_lea.sflag [#allocation3], %s187_s7 }
  0x14   : > { %s524_s23 = sshra.s32 %s198_s13, 4  ;;  %p528_p3 = pneg %p721_p13  ;;  %s525_s23 = int_to_ptr.hbm [resolvable:$true] %s524_s23 }
  0x15   : > { %s526_s25 = scalar_lea.hbm %s525_s23, 32  ;;  %s531_s28 = scalar_lea.hbm %s818_s0, 64 }
  0x16   : > { %p527_p2 = scmp.ne.s32.totalorder %s525_s23, %s526_s25  ;;  %p532_p5 = scmp.lt.s32.totalorder %s525_s23, %s818_s0 }
  0x17   : > { %p533_p8 = scmp.lt.s32.totalorder %s531_s28, %s526_s25 }
  0x18   : > { %p529_p4 = pnand %p528_p3, %p527_p2 }
  0x19   : > { %p534_p10 = por %p533_p8, %p532_p5 }
  0x1a   : > { %p530_p7 = pneg %p529_p4 }
  0x1c   : > { %p535_p9 = pnand %p534_p10, %p530_p7 }
  0x1e   : > { %538 = shalt.err (!%p535_p9)
}
  0x1f   : > { %s622_s7 = smov 256   ;;  %s623_s11 = smov 16  }
  0x20   : > { %474 = dma.hbm_to_vmem [thread:$0]  (!%p721_p13), %s198_s13, 512, %s200_s15, %s188_s17, %s622_s7, %s622_s7, %s623_s11  }
  0x21   : > { %p208_p2 = pnand %p454_p0, %p207_p1 }
  0x22   : > { %s742_s12 = sand.u32 (!%p208_p2), 1, %s612_s19  }
  0x23   : > { %211 = sbr.rel (%p208_p2) target bundleno = 599 (0x257), region = 40  ;;  %s455_s14 = sshll.u32 (!%p208_p2), %s742_s12, 5 }
  0x24   : > { %s214_s23 = scalar_lea.sflag (!%p208_p2), [#allocation3], %s742_s12  ;;  %s217_s25 = scalar_lea.vmem (!%p208_p2), [#allocation2], %s455_s14 }
  0x28   : > { %599 = dma.done.wait (%p699_p6), %s214_s23, 512  }
  0x29   : > { %601 = vsyncadd (%p699_p6), %s214_s23, 4294966784  ;;  %v752_v0 = vld [vmem:[%s217_s25] sm:$0xff]  ;;  %v754_v1 = vld [vmem:[%s217_s25 + $0x8] sm:$0xff]  ;;  %v262_v9 = vlaneseq  ;;  %vm267_vm0 = vcmask 130112   ;;  %vm269_vm1 = vcmask 130048   ;;  %vm295_vm2 = vcmask 64512  }
  0x2a   : > { %v249_v2 = vadd.f32 %v754_v1, %v752_v0  ;;  %v758_v3 = vld [vmem:[%s217_s25 + $0x10] sm:$0xff]  ;;  %v760_v4 = vld [vmem:[%s217_s25 + $0x18] sm:$0xff]  ;;  %v258_v6 = vld [vmem:[%s819_s1 + $0x8] sm:$0xff]  ;;  %s244_s7 = scalar_lea.vmem [#allocation5], %s455_s14  ;;  %s466_s11 = sshll.u32 %s677_s22, 5 }
  0x2b   : > { %v252_v5 = vadd.f32 %v760_v4, %v758_v3  ;;  %286 = vmatpush.msra.mxu0 %v258_v6  ;;  %v257_v7 = vld [vmem:[%s819_s1] sm:$0xff]  ;;  %v263_v10 = vand.u32 127, %v262_v9  ;;  %v340_v23 = vshrl.u32 %v262_v9, 7  ;;  %s371_s13 = scalar_lea.hbm %s823_s5, %s466_s11  ;;  %s372_s15 = sshll.u32 %s244_s7, 4  ;;  %s373_s15 = int_to_ptr.vmem [resolvable:$true] %s372_s15 }
  0x2c   : > { %250 = vadd.xlane.f32.xlu0 %v249_v2  ;;  %v293_v18 = vld [vmem:[%s821_s3] sm:$0xff]  ;;  %s374_s29 = sshll.u32 %s371_s13, 4  ;;  %s360_s14 = scalar_lea.sflag [#allocation4], %s742_s12  ;;  %s375_s29 = int_to_ptr.hbm [resolvable:$true] %s374_s29 }
  0x2d   : > { %287 = vmatpush.msra.mxu0 %v257_v7  ;;  %v265_v12 = vadd.s32 4294967288, %v263_v10  ;;  %314 = vmatpush.msra.mxu1 %v293_v18  ;;  %v259_v19 = vld [vmem:[%s820_s2] sm:$0x1]  ;;  %v347_v24 = vadd.s32 8, %v340_v23  ;;  %s568_s16 = sshra.s32 %s375_s29, 4  ;;  %s574_s8 = scalar_lea.hbm %s823_s5, 64  ;;  %s569_s16 = int_to_ptr.hbm [resolvable:$true] %s568_s16 }
  0x2e   : > { %517 = vset.pattern.permute.xlu1 %v340_v23  ;;  %v294_v25 = vld [vmem:[%s822_s4] sm:$0x1]  ;;  %s570_s22 = scalar_lea.hbm %s569_s16, 32  ;;  %p575_p0 = scmp.lt.s32.totalorder %s569_s16, %s823_s5 }
  0x2f   : > { %519 = vset.pattern.permute.xlu0 %v347_v24  ;;  %p571_p6 = scmp.ne.s32.totalorder %s569_s16, %s570_s22  ;;  %p576_p1 = scmp.lt.s32.totalorder %s574_s8, %s570_s22 }
  0x31   : > { %p572_p9 = pnand %p571_p6, %p706_p11  ;;  %p577_p3 = por %p576_p1, %p575_p0 }
  0x33   : > { %p573_p13 = pneg %p572_p9 }
  0x34   : > { %253 = vadd.xlane.f32.xlu0 %v252_v5 }
  0x35   : > { %p578_p4 = pnand %p577_p3, %p573_p13 }
  0x9f   : > { %v251_v8 = vpop.xlane.xlu0 %250 }
  0xa0   : > { %v255_v11 = vmul.f32 0.00390625, %v251_v8 }
  0xa2   : > { %v264_v15 = vperm.slane %v255_v11, %v263_v10 }
  0xa7   : > { %v254_v13 = vpop.xlane.xlu0 %253 }
  0xa8   : > { %v256_v14 = vmul.f32 0.00390625, %v254_v13 }
  0xaa   : > { %v266_v16 = vperm.slane %v256_v14, %v265_v12 }
  0xac   : > { %v268_v17 = vsel %vm267_vm0, %v266_v16, %v264_v15 }
  0xad   : > { %457 = vmatmul.msk.f32.vlgmr.msra.gmra.mxu0 %vm269_vm1, %v268_v17 }
 0x12a   : > { %v289_v20 = vpop.f32.mrf.mxu0 }
 0x12b   : > { %v290_v21 = vadd.f32 %v289_v20, %v259_v19 }
 0x12d   : > { %v292_v22 = vmax.f32 %v290_v21, 0.0 }
 0x12f   : > { %458 = vmatmul.msk.f32.vlgmr.msra.gmra.mxu1 %vm295_vm2, %v292_v22 }
 0x1ac   : > { %v316_v26 = vpop.f32.mrf.mxu1 }
 0x1ad   : > { %v317_v27 = vadd.f32 %v316_v26, %v294_v25 }
 0x1af   : > { %v459_v28 = vmul.f32 -1.442695, %v317_v27 }
 0x1b1   : > { %520 = vpow2.f32 %v459_v28 }
 0x1b7   : > { %v521_v29 = vpop.eup %520 }
 0x1b8   : > { %v322_v30 = vadd.f32 1.0, %v521_v29 }
 0x1ba   : > { %522 = vrcp.f32 %v322_v30  ;;  %v334_v34 = vand.u32 2147483648, %v322_v30  ;;  %v332_v36 = vand.u32 2147483647, %v322_v30  ;;  %vm328_vm4 = vweird.f32 %v322_v30 }
 0x1bc   : > { %v335_v38 = vor.u32 1.1754944e-38, %v334_v34  ;;  %vm333_vm6 = vcmp.eq.f32.partialorder %v332_v36, 8.507059e+37 }
 0x1c0   : > { %v523_v31 = vpop.eup %522 }
 0x1c1   : > { %v324_v32 = vmul.f32 %v523_v31, %v322_v30  ;;  %vm329_vm3 = vweird.f32 %v523_v31 }
 0x1c2   : > { %vm330_vm5 = vmor %vm328_vm4, %vm329_vm3 }
 0x1c3   : > { %v325_v33 = vsub.f32 1.0, %v324_v32 }
 0x1c5   : > { %v326_v35 = vmul.f32 %v523_v31, %v325_v33 }
 0x1c7   : > { %v327_v37 = vadd.f32 %v523_v31, %v326_v35 }
 0x1c9   : > { %v331_v39 = vsel %vm330_vm5, %v523_v31, %v327_v37 }
 0x1ca   : > { %v336_v40 = vsel %vm333_vm6, %v335_v38, %v331_v39 }
 0x1cb   : > { %v338_v41 = vperm.slane %v336_v40, 0 }
 0x1cd   : > { %343 = vperm.xlu1 %517, %v338_v41  }
 0x1d5   : > { %518 = vset.pattern.permute.xlu1 %v347_v24 }
 0x1dd   : > { %349 = vperm.xlu1 %518, %v338_v41  }
 0x23f   : > { %v344_v42 = vpop.permute.xlu1 %343 }
 0x240   : > { %v351_v43 = vmul.f32 %v344_v42, %v752_v0  ;;  %v352_v44 = vmul.f32 %v344_v42, %v754_v1 }
 0x242   : > { %355 = vst [vmem:[%s244_s7] sm:$0xff] %v351_v43 }
 0x243   : > { %356 = vst [vmem:[%s244_s7 + $0x8] sm:$0xff] %v352_v44 }
 0x24f   : > { %v350_v45 = vpop.permute.xlu1 %349 }
 0x250   : > { %v353_v46 = vmul.f32 %v350_v45, %v758_v3  ;;  %v354_v47 = vmul.f32 %v350_v45, %v760_v4 }
 0x252   : > { %357 = vst [vmem:[%s244_s7 + $0x10] sm:$0xff] %v353_v46 }
 0x253   : > { %358 = vst [vmem:[%s244_s7 + $0x18] sm:$0xff] %v354_v47 }
 0x254   : > { %581 = shalt.err (!%p578_p4)
}
 0x255   : > { %s624_s12 = smov 256   ;;  %s625_s10 = smov 16  }
 0x256   : > { %469 = dma.vmem_to_hbm [thread:$0]  (%p706_p11), %s373_s15, 512, %s375_s29, %s360_s14, %s624_s12, %s624_s12, %s625_s10  }
 0x257 PF: > { %s389_s7 = sand.u32 1, %s608_s18   ;;  %p829_p7 = scmp.ge.s32.totalorder %s620_s21, 2 }
 0x258   : > { %s390_s11 = scalar_lea.sflag [#allocation4], %s389_s7 }
 0x259   : > { %p476_p5 = pnand %p829_p7, %p710_p12 }
 0x25b   : > { %p477_p8 = pneg %p476_p5 }
 0x25d   : > { %603 = dma.done.wait (%p477_p8), %s390_s11, 512  }
 0x25e   : > { %605 = vsyncadd (%p477_p8), %s390_s11, 4294966784  ;;  %p18_p10 = scmp.ge.s32.totalorder %s681_s24, 4   ;;  %s830_s18 = smov %s612_s19 }
 0x25f   : > { %s831_s19 = smov %s616_s20  ;;  %s832_s20 = smov %s693_s27 }
 0x260   : > { %s833_s21 = smov %s681_s24  ;;  %20 = sbr.rel (!%p18_p10) target bundleno = 5 (0x5), region = 85 }
 0x265   :  { %396 = vsyncpa [#allocation3], 1 }
 0x266   :  { %398 = vsyncpa [#allocation3 + $0x1], 1 }
 0x267   :  { %399 = vsyncpa [#allocation4], 1 }
 0x268   :  { %401 = vsyncpa [#allocation4 + $0x1], 1 }

</bundles_post_ra>
